<compile_context>
chip_gen: v7x
topology: tpu7x:2x2x1
jax: 0.10.0
libtpu: 0.0.40
codegen_flags: <defaults>
</compile_context>

<pallas_src>
import jax
import jax.numpy as jnp
from jax.experimental import pallas as pl
from jax.experimental.pallas import tpu as pltpu

ALPHA = 0.1
BETA = 0.9
SMOOTH = 1e-6
TEMPERATURE = 0.1


def tversky_loss(inputs, targets, *, tile_n=None, num_splits=2):
    """inputs: [N, C] logits (any float dtype); targets: [N] int class ids -> scalar loss."""
    n, c = inputs.shape
    itemsize = jnp.dtype(inputs.dtype).itemsize

    # ---- tile sizing against scoped VMEM ------------------------------------
    if tile_n is None:
        # 2 pipeline buffers per input stream; keep the double-buffered working set
        # around 8 MiB so it fits v5e's 16 MiB scoped-VMEM default with headroom.
        budget = 8 * 1024 * 1024
        per_row = 2 * (c * itemsize + 4)  # logits row + int32 target, double buffered
        tile_n = max(8, min(2048, budget // per_row))
    tile_n = max(8, min(tile_n, pl.cdiv(n, num_splits)))
    tile_n = ((tile_n + 7) // 8) * 8  # sublane multiple

    steps = pl.cdiv(n, num_splits * tile_n)
    n_padded = num_splits * steps * tile_n

    # ---- pad ragged batch (padded rows are masked out inside the kernel) -----
    targets2d = targets.astype(jnp.int32).reshape(n, 1)
    if n_padded != n:
        inputs_p = jnp.pad(inputs, ((0, n_padded - n), (0, 0)))
        targets_p = jnp.pad(targets2d, ((0, n_padded - n), (0, 0)))
    else:
        inputs_p = inputs
        targets_p = targets2d

    # ---- kernel ---------------------------------------------------------------
    def kernel(x_ref, t_ref, tp_ref, ps_ref, cnt_ref):
        i = pl.program_id(1)

        @pl.when(i == 0)
        def _():
            tp_ref[...] = jnp.zeros_like(tp_ref)
            ps_ref[...] = jnp.zeros_like(ps_ref)
            cnt_ref[...] = jnp.zeros_like(cnt_ref)

        # softmax(logits / temperature) over the class axis for this batch tile
        x = x_ref[...].astype(jnp.float32) * (1.0 / TEMPERATURE)
        m = jnp.max(x, axis=1, keepdims=True)
        e = jnp.exp(x - m)
        probs = e * pl.reciprocal(jnp.sum(e, axis=1, keepdims=True), approx=False)

        class_ids = jax.lax.broadcasted_iota(jnp.int32, (tile_n, c), 1)
        onehot = (class_ids == t_ref[...]).astype(jnp.float32)

        if n_padded != n:
            s = pl.program_id(0)
            row = jax.lax.broadcasted_iota(jnp.int32, (tile_n, 1), 0)
            base = (s * steps + i) * tile_n
            valid = ((base + row) < n).astype(jnp.float32)
            probs = probs * valid
            onehot = onehot * valid

        # Accumulate with VPU adds only: collapse tile_n rows to 8 sublane rows by
        # summing over vreg groups; the final cross-sublane reduce happens in JAX.
        k = tile_n // 8
        probs3 = probs.reshape(k, 8, c)
        oneh3 = onehot.reshape(k, 8, c)
        tp_ref[...] += jnp.sum(probs3 * oneh3, axis=0)   # TP partial
        ps_ref[...] += jnp.sum(probs3, axis=0)           # sum of probs partial
        cnt_ref[...] += jnp.sum(oneh3, axis=0)           # per-class count partial

    # ---- pallas_call ----------------------------------------------------------
    out_shape = jax.ShapeDtypeStruct((num_splits, 8, c), jnp.float32)
    out_spec = pl.BlockSpec((None, 8, c), lambda s, i: (s, 0, 0))

    vmem_needed = (
        2 * tile_n * (c * itemsize + 4)   # double-buffered logits + target tiles
        + 2 * 3 * 8 * c * 4               # three (8, C) f32 output accumulators (buffered)
    )
    vmem_limit = int(min(max(vmem_needed + (4 << 20), 16 << 20), 48 << 20))

    tp_parts, ps_parts, cnt_parts = pl.pallas_call(
        kernel,
        out_shape=(out_shape, out_shape, out_shape),
        grid_spec=pltpu.PrefetchScalarGridSpec(
            num_scalar_prefetch=0,
            grid=(num_splits, steps),
            in_specs=[
                pl.BlockSpec((tile_n, c), lambda s, i: (s * steps + i, 0)),
                pl.BlockSpec((tile_n, 1), lambda s, i: (s * steps + i, 0)),
            ],
            out_specs=(out_spec, out_spec, out_spec),
        ),
        compiler_params=pltpu.CompilerParams(
            dimension_semantics=("parallel", "arbitrary"),
            vmem_limit_bytes=vmem_limit,
        ),
    )(inputs_p, targets_p)

    # ---- tiny epilogue in JAX (per-class Tversky over C values) ---------------
    tp = jnp.sum(tp_parts, axis=(0, 1))
    probsum = jnp.sum(ps_parts, axis=(0, 1))
    cnt = jnp.sum(cnt_parts, axis=(0, 1))
    fp = probsum - tp
    fn = cnt - tp
    tversky = (tp + SMOOTH) / (tp + ALPHA * fp + BETA * fn + SMOOTH)
    return jnp.mean(1.0 - tversky)


def _reference(inputs, targets):
    num_classes = inputs.shape[1]
    onehot = jax.nn.one_hot(targets, num_classes, dtype=jnp.float32)
    probs = jax.nn.softmax(inputs.astype(jnp.float32) / TEMPERATURE, axis=1)
    tp = jnp.sum(probs * onehot, axis=0)
    fp = jnp.sum(probs * (1.0 - onehot), axis=0)
    fn = jnp.sum((1.0 - probs) * onehot, axis=0)
    tversky = (tp + SMOOTH) / (tp + ALPHA * fp + BETA * fn + SMOOTH)
    return jnp.mean(1.0 - tversky)


if __name__ == "__main__":
    key = jax.random.PRNGKey(0)
    k1, k2 = jax.random.split(key)
    N, C = 16, 32  # batch, num_classes (small demo shapes)
    inputs = jax.random.normal(k1, (N, C), dtype=jnp.float32)
    targets = jax.random.randint(k2, (N,), 0, C, dtype=jnp.int32)

    loss = tversky_loss(inputs, targets)
    jax.block_until_ready(loss)

    ref = _reference(inputs, targets)
    assert jnp.allclose(loss, ref, atol=1e-5, rtol=1e-5), (loss, ref)

    # Also exercise the ragged-batch (padding + masking) path.
    N2 = 13
    inputs2 = jax.random.normal(k1, (N2, C), dtype=jnp.float32)
    targets2 = jax.random.randint(k2, (N2,), 0, C, dtype=jnp.int32)
    loss2 = tversky_loss(inputs2, targets2)
    jax.block_until_ready(loss2)
    ref2 = _reference(inputs2, targets2)
    assert jnp.allclose(loss2, ref2, atol=1e-5, rtol=1e-5), (loss2, ref2)

    print("KERNEL_OK")
</pallas_src>

<mosaic_0001>
module attributes {stable_mosaic.version = 11 : i64} {
  func.func @kernel(%arg0: i32, %arg1: i32, %arg2: memref<8x32xf32, #tpu.memory_space<vmem>>, %arg3: memref<8x1xi32, #tpu.memory_space<vmem>>, %arg4: memref<1x8x32xf32, #tpu.memory_space<vmem>>, %arg5: memref<1x8x32xf32, #tpu.memory_space<vmem>>, %arg6: memref<1x8x32xf32, #tpu.memory_space<vmem>>) attributes {dimension_semantics = [#tpu.dimension_semantics<parallel>, #tpu.dimension_semantics<arbitrary>], iteration_bounds = array<i64: 2, 1>, scalar_prefetch = 0 : i64, scratch_operands = 0 : i64, tpu.core_type = #tpu.core_type<tc>, window_params = [{transform_indices = @transform_0, window_bounds = array<i64: 8, 32>}, {transform_indices = @transform_1, window_bounds = array<i64: 8, 1>}, {transform_indices = @transform_2, window_bounds = array<i64: 1, 8, 32>}, {transform_indices = @transform_3, window_bounds = array<i64: 1, 8, 32>}, {transform_indices = @transform_4, window_bounds = array<i64: 1, 8, 32>}]} {
    %c0_i32 = arith.constant 0 : i32
    %0 = arith.cmpi eq, %arg1, %c0_i32 : i32
    %1 = arith.extui %0 : i1 to i32
    %c0_i32_0 = arith.constant 0 : i32
    %2 = arith.cmpi ne, %1, %c0_i32_0 : i32
    scf.if %2 {
      %cst_27 = arith.constant 0.000000e+00 : f32
      %46 = vector.broadcast %cst_27 : f32 to vector<8x32xf32>
      %c0_28 = arith.constant 0 : index
      %c0_29 = arith.constant 0 : index
      %c0_30 = arith.constant 0 : index
      %47 = vector.load %arg4[%c0_28, %c0_29, %c0_30] : memref<1x8x32xf32, #tpu.memory_space<vmem>>, vector<1x8x32xf32>
      %48 = vector.shape_cast %47 : vector<1x8x32xf32> to vector<8x32xf32>
      %49 = vector.shape_cast %46 : vector<8x32xf32> to vector<1x8x32xf32>
      tpu.vector_store %arg4[%c0_28, %c0_29, %c0_30], %49 {strides = array<i32>} : memref<1x8x32xf32, #tpu.memory_space<vmem>>, vector<1x8x32xf32>,
      %cst_31 = arith.constant 0.000000e+00 : f32
      %50 = vector.broadcast %cst_31 : f32 to vector<8x32xf32>
      %c0_32 = arith.constant 0 : index
      %c0_33 = arith.constant 0 : index
      %c0_34 = arith.constant 0 : index
      %51 = vector.load %arg5[%c0_32, %c0_33, %c0_34] : memref<1x8x32xf32, #tpu.memory_space<vmem>>, vector<1x8x32xf32>
      %52 = vector.shape_cast %51 : vector<1x8x32xf32> to vector<8x32xf32>
      %53 = vector.shape_cast %50 : vector<8x32xf32> to vector<1x8x32xf32>
      tpu.vector_store %arg5[%c0_32, %c0_33, %c0_34], %53 {strides = array<i32>} : memref<1x8x32xf32, #tpu.memory_space<vmem>>, vector<1x8x32xf32>,
      %cst_35 = arith.constant 0.000000e+00 : f32
      %54 = vector.broadcast %cst_35 : f32 to vector<8x32xf32>
      %c0_36 = arith.constant 0 : index
      %c0_37 = arith.constant 0 : index
      %c0_38 = arith.constant 0 : index
      %55 = vector.load %arg6[%c0_36, %c0_37, %c0_38] : memref<1x8x32xf32, #tpu.memory_space<vmem>>, vector<1x8x32xf32>
      %56 = vector.shape_cast %55 : vector<1x8x32xf32> to vector<8x32xf32>
      %57 = vector.shape_cast %54 : vector<8x32xf32> to vector<1x8x32xf32>
      tpu.vector_store %arg6[%c0_36, %c0_37, %c0_38], %57 {strides = array<i32>} : memref<1x8x32xf32, #tpu.memory_space<vmem>>, vector<1x8x32xf32>,
    } else {
    }
    %c0 = arith.constant 0 : index
    %c0_1 = arith.constant 0 : index
    %3 = vector.load %arg2[%c0, %c0_1] : memref<8x32xf32, #tpu.memory_space<vmem>>, vector<8x32xf32>
    %cst = arith.constant 1.000000e+01 : f32
    %4 = vector.broadcast %cst : f32 to vector<8x32xf32>
    %5 = arith.mulf %3, %4 : vector<8x32xf32>
    %cst_2 = arith.constant dense<0xFF800000> : vector<8xf32>
    %6 = vector.multi_reduction <maximumf>, %5, %cst_2 [1] : vector<8x32xf32> to vector<8xf32>
    %7 = vector.shape_cast %6 : vector<8xf32> to vector<8x1xf32>
    %8 = vector.broadcast %7 : vector<8x1xf32> to vector<8x32xf32>
    %9 = arith.subf %5, %8 : vector<8x32xf32>
    %10 = math.exp %9 : vector<8x32xf32>
    %cst_3 = arith.constant dense<0.000000e+00> : vector<8xf32>
    %11 = vector.multi_reduction <add>, %10, %cst_3 [1] : vector<8x32xf32> to vector<8xf32>
    %12 = vector.shape_cast %11 : vector<8xf32> to vector<8x1xf32>
    %13 = tpu.reciprocal %12 : vector<8x1xf32> -> vector<8x1xf32>
    %14 = vector.broadcast %13 : vector<8x1xf32> to vector<8x32xf32>
    %15 = arith.mulf %10, %14 : vector<8x32xf32>
    %16 = tpu.iota {dimensions = array<i32: 1>} : vector<8x32xi32>
    %c0_4 = arith.constant 0 : index
    %c0_5 = arith.constant 0 : index
    %17 = vector.load %arg3[%c0_4, %c0_5] : memref<8x1xi32, #tpu.memory_space<vmem>>, vector<8x1xi32>
    %18 = vector.broadcast %17 : vector<8x1xi32> to vector<8x32xi32>
    %19 = arith.cmpi eq, %16, %18 : vector<8x32xi32>
    %20 = arith.extui %19 : vector<8x32xi1> to vector<8x32xi32>
    %21 = arith.sitofp %20 : vector<8x32xi32> to vector<8x32xf32>
    %22 = vector.shape_cast %15 : vector<8x32xf32> to vector<1x8x32xf32>
    %23 = vector.shape_cast %21 : vector<8x32xf32> to vector<1x8x32xf32>
    %c0_6 = arith.constant 0 : index
    %c0_7 = arith.constant 0 : index
    %c0_8 = arith.constant 0 : index
    %24 = vector.load %arg4[%c0_6, %c0_7, %c0_8] : memref<1x8x32xf32, #tpu.memory_space<vmem>>, vector<1x8x32xf32>
    %25 = vector.shape_cast %24 : vector<1x8x32xf32> to vector<8x32xf32>
    %26 = arith.mulf %22, %23 : vector<1x8x32xf32>
    %cst_9 = arith.constant dense<0.000000e+00> : vector<8x32xf32>
    %27 = vector.multi_reduction <add>, %26, %cst_9 [0] : vector<1x8x32xf32> to vector<8x32xf32>
    %28 = arith.addf %25, %27 : vector<8x32xf32>
    %c0_10 = arith.constant 0 : index
    %c0_11 = arith.constant 0 : index
    %c0_12 = arith.constant 0 : index
    %29 = vector.load %arg4[%c0_10, %c0_11, %c0_12] : memref<1x8x32xf32, #tpu.memory_space<vmem>>, vector<1x8x32xf32>
    %30 = vector.shape_cast %29 : vector<1x8x32xf32> to vector<8x32xf32>
    %31 = vector.shape_cast %28 : vector<8x32xf32> to vector<1x8x32xf32>
    tpu.vector_store %arg4[%c0_10, %c0_11, %c0_12], %31 {strides = array<i32>} : memref<1x8x32xf32, #tpu.memory_space<vmem>>, vector<1x8x32xf32>,
    %c0_13 = arith.constant 0 : index
    %c0_14 = arith.constant 0 : index
    %c0_15 = arith.constant 0 : index
    %32 = vector.load %arg5[%c0_13, %c0_14, %c0_15] : memref<1x8x32xf32, #tpu.memory_space<vmem>>, vector<1x8x32xf32>
    %33 = vector.shape_cast %32 : vector<1x8x32xf32> to vector<8x32xf32>
    %cst_16 = arith.constant dense<0.000000e+00> : vector<8x32xf32>
    %34 = vector.multi_reduction <add>, %22, %cst_16 [0] : vector<1x8x32xf32> to vector<8x32xf32>
    %35 = arith.addf %33, %34 : vector<8x32xf32>
    %c0_17 = arith.constant 0 : index
    %c0_18 = arith.constant 0 : index
    %c0_19 = arith.constant 0 : index
    %36 = vector.load %arg5[%c0_17, %c0_18, %c0_19] : memref<1x8x32xf32, #tpu.memory_space<vmem>>, vector<1x8x32xf32>
    %37 = vector.shape_cast %36 : vector<1x8x32xf32> to vector<8x32xf32>
    %38 = vector.shape_cast %35 : vector<8x32xf32> to vector<1x8x32xf32>
    tpu.vector_store %arg5[%c0_17, %c0_18, %c0_19], %38 {strides = array<i32>} : memref<1x8x32xf32, #tpu.memory_space<vmem>>, vector<1x8x32xf32>,
    %c0_20 = arith.constant 0 : index
    %c0_21 = arith.constant 0 : index
    %c0_22 = arith.constant 0 : index
    %39 = vector.load %arg6[%c0_20, %c0_21, %c0_22] : memref<1x8x32xf32, #tpu.memory_space<vmem>>, vector<1x8x32xf32>
    %40 = vector.shape_cast %39 : vector<1x8x32xf32> to vector<8x32xf32>
    %cst_23 = arith.constant dense<0.000000e+00> : vector<8x32xf32>
    %41 = vector.multi_reduction <add>, %23, %cst_23 [0] : vector<1x8x32xf32> to vector<8x32xf32>
    %42 = arith.addf %40, %41 : vector<8x32xf32>
    %c0_24 = arith.constant 0 : index
    %c0_25 = arith.constant 0 : index
    %c0_26 = arith.constant 0 : index
    %43 = vector.load %arg6[%c0_24, %c0_25, %c0_26] : memref<1x8x32xf32, #tpu.memory_space<vmem>>, vector<1x8x32xf32>
    %44 = vector.shape_cast %43 : vector<1x8x32xf32> to vector<8x32xf32>
    %45 = vector.shape_cast %42 : vector<8x32xf32> to vector<1x8x32xf32>
    tpu.vector_store %arg6[%c0_24, %c0_25, %c0_26], %45 {strides = array<i32>} : memref<1x8x32xf32, #tpu.memory_space<vmem>>, vector<1x8x32xf32>,
    return
  }
  func.func @transform_0(%arg0: i32, %arg1: i32) -> (i32, i32) {
    %c1_i32 = arith.constant 1 : i32
    %0 = arith.muli %arg0, %c1_i32 : i32
    %1 = arith.addi %0, %arg1 : i32
    %c0_i32 = arith.constant 0 : i32
    %c0_i32_0 = arith.constant 0 : i32
    return %1, %c0_i32 : i32, i32
  }
  func.func @transform_1(%arg0: i32, %arg1: i32) -> (i32, i32) {
    %c1_i32 = arith.constant 1 : i32
    %0 = arith.muli %arg0, %c1_i32 : i32
    %1 = arith.addi %0, %arg1 : i32
    %c0_i32 = arith.constant 0 : i32
    %c0_i32_0 = arith.constant 0 : i32
    return %1, %c0_i32 : i32, i32
  }
  func.func @transform_2(%arg0: i32, %arg1: i32) -> (i32, i32, i32) {
    %c0_i32 = arith.constant 0 : i32
    %c0_i32_0 = arith.constant 0 : i32
    %c0_i32_1 = arith.constant 0 : i32
    return %arg0, %c0_i32, %c0_i32_0 : i32, i32, i32
  }
  func.func @transform_3(%arg0: i32, %arg1: i32) -> (i32, i32, i32) {
    %c0_i32 = arith.constant 0 : i32
    %c0_i32_0 = arith.constant 0 : i32
    %c0_i32_1 = arith.constant 0 : i32
    return %arg0, %c0_i32, %c0_i32_0 : i32, i32, i32
  }
  func.func @transform_4(%arg0: i32, %arg1: i32) -> (i32, i32, i32) {
    %c0_i32 = arith.constant 0 : i32
    %c0_i32_0 = arith.constant 0 : i32
    %c0_i32_1 = arith.constant 0 : i32
    return %arg0, %c0_i32, %c0_i32_0 : i32, i32, i32
  }
}

</mosaic_0001>

<bundles_post_ra>
// kernel: tpu_custom_call.1
= control target key start
LH: loop header
LB: loop body
LE: loop exit
PB: predicated region body
PF: predicated region fallthrough
CT: control target
= control target key end

     0   :  { %10 = vsyncpa [#allocation3], 0  ;;  %s954_s0 = inlined_call_operand.vmem [shape: f32[16,32], index: 0, kind: input, shape index: {}]   ;;  %s955_s1 = inlined_call_operand.vmem [shape: s32[16,1], index: 1, kind: input, shape index: {}]   ;;  %s956_s2 = inlined_call_operand.hbm [shape: f32[2,8,32], index: 2, kind: output, shape index: {0}]   ;;  %s957_s3 = inlined_call_operand.hbm [shape: f32[2,8,32], index: 3, kind: output, shape index: {1}]   ;;  %s958_s4 = inlined_call_operand.hbm [shape: f32[2,8,32], index: 4, kind: output, shape index: {2}]  }
   0x1   :  { %12 = vsyncpa [#allocation3 + $0x1], 0 }
   0x2   :  { %13 = vsyncpa [#allocation5], 0 }
   0x3   :  { %15 = vsyncpa [#allocation5 + $0x1], 0  ;;  %s750_s15 = smov 0   ;;  %s752_s16 = smov 0  }
   0x4   :  { %s754_s17 = smov 0   ;;  %s756_s18 = smov 0  }
   0x5   :  { %s758_s19 = smov 0   ;;  %s760_s20 = smov 0  }
   0x6 LB: > { %s488_s21 = sadd.s32 4294967295, %s718_s20   ;;  %s959_s22 = sadd.s32 4294967294, %s718_s20   ;;  %s718_s20 = sphi %s760_s20, %s21_s20   ;;  %s714_s19 = sphi %s758_s19, %s969_s19   ;;  %s710_s18 = sphi %s756_s18, %s968_s18   ;;  %s706_s17 = sphi %s754_s17, %s967_s17   ;;  %s702_s16 = sphi %s752_s16, %s966_s16   ;;  %s698_s15 = sphi %s750_s15, %s965_s15  }
   0x7   : > { %s33_s23 = sadd.s32 1, %s714_s19  ;;  %s96_s24 = sadd.s32 1, %s706_s17 }
   0x8   : > { %p35_p0 = scmp.ge.s32.totalorder %s33_s23, 2  ;;  %p106_p1 = scmp.ne.s32.totalorder %s706_s17, %s702_s16 }
   0x9   : > { %p107_p2 = scmp.eq.s32.totalorder %s488_s21, 1  ;;  %p112_p3 = scmp.ne.s32.totalorder %s702_s16, %s698_s15 }
   0xa   : > { %s971_s23 = smov (%p35_p0, %s33_s23), 0  ;;  %p113_p5 = scmp.eq.s32.totalorder %s959_s22, 1 }
   0xb   : > { %p792_p4 = por %p107_p2, %p106_p1  ;;  %s93_s26 = ssub.s32 %s714_s19, %s971_s23 }
   0xc   : > { %p492_p6 = scmp.ge.s32.totalorder %s718_s20, 1  ;;  %p94_p7 = scmp.eq.s32.totalorder %s93_s26, 0 }
   0xd   : > { %p801_p8 = por %p113_p5, %p112_p3  ;;  %p201_p9 = scmp.lt.s32.totalorder %s718_s20, 3 }
   0xe   : > { %s807_s28 = scalar_select %p94_p7, %s706_s17, %s96_s24  }
   0xf   : > { %p202_p10 = pnand %p492_p6, %p201_p9 }
  0x10   : > { %p243_p11 = scmp.lt.s32.totalorder (!%p202_p10), %s710_s18, 1  ;;  %vm258_vm0 = vcmask (!%p202_p10), 261120   ;;  %v720_v3 = vmov (!%p202_p10), 0   ;;  %s960_s11 = sand.u32 (!%p202_p10), 1, %s702_s16   ;;  %v276_v10 = vlaneseq (!%p202_p10)  ;;  %v721_v11 = vmov (!%p202_p10), 0.0  }
  0x11   : > { %205 = sbr.rel (%p202_p10) target bundleno = 407 (0x197), region = 28  ;;  %574 = vset.pattern.permute.xlu1 (!%p202_p10), %v720_v3  ;;  %575 = vset.pattern.permute.xlu0 (!%p202_p10), %v720_v3  ;;  %s493_s12 = sshll.u32 (!%p202_p10), %s960_s11, 3 }
  0x12   : > { %s822_s13 = scalar_lea.vmem (!%p202_p10), [#allocation2], %s493_s12  ;;  %s234_s14 = scalar_lea.vmem (!%p202_p10), [#allocation4], %s493_s12  ;;  %v277_v12 = vand.u32 (!%p202_p10), 127, %v276_v10 }
  0x13   : > { %259 = vst.msk [vmem:[%s822_s13] sm:$0xff] (!%p202_p10), %vm258_vm0, %v721_v11  ;;  %260 = vst.msk [vmem:[%s234_s14] sm:$0xff] (!%p202_p10), %vm258_vm0, %v721_v11  ;;  %s241_s24 = scalar_lea.vmem (!%p202_p10), [#allocation6], %s493_s12  ;;  %s831_s26 = sand.u32 (!%p202_p10), 1, %s488_s21  }
  0x14   : > { %261 = vst.msk [vmem:[%s241_s24] sm:$0xff] (!%p202_p10), %vm258_vm0, %v721_v11  ;;  %s348_s5 = sshll.u32 (!%p202_p10), %s241_s24, 4  ;;  %s322_s9 = sshll.u32 (!%p202_p10), %s822_s13, 4  ;;  %s848_s5 = int_to_ptr.vmem [resolvable:$true] %s348_s5  ;;  %s856_s9 = int_to_ptr.vmem [resolvable:$true] %s322_s9 }
  0x15   : > { %s722_s21 = smov (!%p202_p10), [#allocation4]  }
  0x18   : > { %s244_s29 = scalar_select %p243_p11, %s710_s18, 1 }
  0x1a   : > { %s496_s30 = sshll.u32 %s244_s29, 3  ;;  %s502_s29 = sshll.u32 %s710_s18, 7  ;;  %v290_v19 = vld [vmem:[%s234_s14] sm:$0xff]  ;;  %v285_v21 = vld [vmem:[%s822_s13] sm:$0xff] }
  0x1b   : > { %s246_s7 = scalar_lea.vmem %s954_s0, %s496_s30  ;;  %s252_s10 = scalar_lea.vmem %s955_s1, %s496_s30  ;;  %v294_v15 = vld [vmem:[%s241_s24] sm:$0xff] }
  0x1c   : > { %v262_v0 = vld [vmem:[%s246_s7] sm:$0xff]  ;;  %s335_s30 = sshll.u32 %s234_s14, 4  ;;  %s838_s8 = scalar_lea.hbm %s957_s3, %s502_s29  ;;  %s841_s30 = int_to_ptr.vmem [resolvable:$true] %s335_s30 }
  0x1d   : > { %v263_v1 = vmul.f32 10.0, %v262_v0  ;;  %v278_v4 = vld [vmem:[%s252_s10] sm:$0xff]  ;;  %s846_s10 = scalar_lea.hbm %s958_s4, %s502_s29  ;;  %s854_s6 = scalar_lea.hbm %s956_s2, %s502_s29 }
  0x1e   : > { %280 = vperm.xlu1 %574, %v278_v4   ;;  %s304_s7 = scalar_lea.sflag [#allocation5], %s831_s26  ;;  %s580_s22 = scalar_lea.vmem %s841_s30, 128 }
  0x1f   : > { %v265_v2 = vsel %vm258_vm0, %v263_v1, -inf  ;;  %p581_p12 = scmp.ne.s32.totalorder %s841_s30, %s580_s22  ;;  %s584_s18 = sshll.u32 %s722_s21, 4  ;;  %s585_s18 = int_to_ptr.vmem [resolvable:$false] %s584_s18 }
  0x20   : > { %266 = vmax.xlane.f32.xlu0 %v265_v2  ;;  %s586_s11 = scalar_lea.vmem %s585_s18, 256  ;;  %p587_p1 = scmp.lt.s32.totalorder %s841_s30, %s585_s18 }
  0x21   : > { %p582_p13 = pnand %p581_p12, %p792_p4  ;;  %p588_p2 = scmp.lt.s32.totalorder %s586_s11, %s580_s22 }
  0x23   : > { %p583_p0 = pneg %p582_p13  ;;  %p589_p3 = por %p588_p2, %p587_p1 }
  0x25   : > { %p590_p5 = pnand %p589_p3, %p583_p0 }
  0x9d   : > { %v281_v13 = vpop.permute.xlu1 %280 }
  0x9e   : > { %vm282_vm1 = vcmp.eq.s32.totalorder %v277_v12, %v281_v13 }
  0x9f   : > { %v498_v14 = vsel %vm282_vm1, 1.0, %v721_v11 }
  0xa0   : > { %v296_v16 = vadd.f32 %v498_v14, %v294_v15 }
  0xa2   : > { %297 = vst.msk [vmem:[%s241_s24] sm:$0xff] %vm258_vm0, %v296_v16 }
  0xad   : > { %v267_v5 = vpop.xlane.xlu0 %266 }
  0xae   : > { %v268_v6 = vsub.f32 %v263_v1, %v267_v5 }
  0xb0   : > { %v269_v7 = vmul.f32 1.442695, %v268_v6 }
  0xb2   : > { %576 = vpow2.f32 %v269_v7 }
  0xbc   : > { %v577_v8 = vpop.eup %576 }
  0xbd   : > { %v271_v9 = vsel %vm258_vm0, %v577_v8, 0.0 }
  0xbe   : > { %272 = vadd.xlane.f32.xlu0 %v271_v9 }
 0x14b   : > { %v273_v17 = vpop.xlane.xlu0 %272 }
 0x14c   : > { %578 = vrcp.f32 %v273_v17 }
 0x156   : > { %v579_v18 = vpop.eup %578 }
 0x157   : > { %v275_v20 = vmul.f32 %v579_v18, %v577_v8 }
 0x159   : > { %v286_v22 = vmul.f32 %v498_v14, %v275_v20  ;;  %v292_v23 = vadd.f32 %v290_v19, %v275_v20 }
 0x15b   : > { %v288_v24 = vadd.f32 %v286_v22, %v285_v21  ;;  %293 = vst.msk [vmem:[%s234_s14] sm:$0xff] %vm258_vm0, %v292_v23 }
 0x15c   : > { %593 = shalt.err (!%p590_p5)
}
 0x15d   : > { %s594_s14 = scalar_lea.hbm %s838_s8, 128  ;;  %s598_s24 = scalar_lea.hbm %s957_s3, 256 }
 0x15e   : > { %p595_p6 = scmp.ne.s32.totalorder %s838_s8, %s594_s14  ;;  %p599_p10 = scmp.lt.u32.totalorder %s838_s8, %s957_s3 }
 0x15f   : > { %p600_p11 = scmp.lt.u32.totalorder %s598_s24, %s594_s14  ;;  %p602_p13 = scmp.lt.u32.totalorder %s594_s14, %s838_s8 }
 0x160   : > { %p596_p7 = pnand %p595_p6, %p792_p4 }
 0x161   : > { %p601_p12 = por %p600_p11, %p599_p10 }
 0x162   : > { %p597_p9 = pneg %p596_p7 }
 0x163   : > { %p603_p0 = por %p602_p13, %p601_p12 }
 0x165   : > { %p604_p1 = pnand %p603_p0, %p597_p9 }
 0x167   : > { %607 = shalt.err (!%p604_p1)
}
 0x168   : > { %508 = dma.vmem_to_hbm [thread:$0]  (%p792_p4), %s841_s30, 128, %s838_s8, %s304_s7   ;;  %289 = vst.msk [vmem:[%s822_s13] sm:$0xff] %vm258_vm0, %v288_v24 }
 0x169   : > { %s608_s22 = scalar_lea.vmem %s848_s5, 128  ;;  %s723_s11 = smov [#allocation6]  }
 0x16a   : > { %p609_p2 = scmp.ne.s32.totalorder %s848_s5, %s608_s22  ;;  %s612_s14 = sshll.u32 %s723_s11, 4  ;;  %s613_s14 = int_to_ptr.vmem [resolvable:$false] %s612_s14 }
 0x16b   : > { %s614_s29 = scalar_lea.vmem %s613_s14, 256  ;;  %p615_p6 = scmp.lt.s32.totalorder %s848_s5, %s613_s14 }
 0x16c   : > { %p610_p3 = pnand %p609_p2, %p792_p4  ;;  %p616_p7 = scmp.lt.s32.totalorder %s614_s29, %s608_s22 }
 0x16e   : > { %p611_p5 = pneg %p610_p3  ;;  %p617_p9 = por %p616_p7, %p615_p6 }
 0x170   : > { %p618_p10 = pnand %p617_p9, %p611_p5 }
 0x172   : > { %621 = shalt.err (!%p618_p10)
}
 0x173   : > { %s622_s13 = scalar_lea.hbm %s846_s10, 128  ;;  %s626_s12 = scalar_lea.hbm %s958_s4, 256 }
 0x174   : > { %p623_p11 = scmp.ne.s32.totalorder %s846_s10, %s622_s13  ;;  %p627_p0 = scmp.lt.u32.totalorder %s846_s10, %s958_s4 }
 0x175   : > { %p628_p1 = scmp.lt.u32.totalorder %s626_s12, %s622_s13  ;;  %p630_p3 = scmp.lt.u32.totalorder %s622_s13, %s846_s10 }
 0x176   : > { %p624_p12 = pnand %p623_p11, %p792_p4 }
 0x177   : > { %p629_p2 = por %p628_p1, %p627_p0 }
 0x178   : > { %p625_p13 = pneg %p624_p12 }
 0x179   : > { %p631_p5 = por %p630_p3, %p629_p2 }
 0x17b   : > { %p632_p6 = pnand %p631_p5, %p625_p13 }
 0x17d   : > { %635 = shalt.err (!%p632_p6)
}
 0x17e   : > { %509 = dma.vmem_to_hbm [thread:$0]  (%p792_p4), %s848_s5, 128, %s846_s10, %s304_s7  }
 0x17f   : > { %s963_s18 = sand.u32 1, %s702_s16   ;;  %s636_s11 = scalar_lea.vmem %s856_s9, 128 }
 0x180   : > { %s299_s22 = scalar_lea.sflag [#allocation3], %s963_s18  ;;  %p637_p7 = scmp.ne.s32.totalorder %s856_s9, %s636_s11 }
 0x181   : > { %s724_s14 = smov [#allocation2]  }
 0x182   : > { %p638_p9 = pnand %p637_p7, %p792_p4  ;;  %s640_s29 = sshll.u32 %s724_s14, 4  ;;  %s641_s29 = int_to_ptr.vmem [resolvable:$false] %s640_s29 }
 0x183   : > { %s642_s13 = scalar_lea.vmem %s641_s29, 256  ;;  %p643_p11 = scmp.lt.s32.totalorder %s856_s9, %s641_s29 }
 0x184   : > { %p639_p10 = pneg %p638_p9  ;;  %p644_p12 = scmp.lt.s32.totalorder %s642_s13, %s636_s11 }
 0x186   : > { %p645_p13 = por %p644_p12, %p643_p11 }
 0x188   : > { %p646_p0 = pnand %p645_p13, %p639_p10 }
 0x18a   : > { %649 = shalt.err (!%p646_p0)
}
 0x18b   : > { %s650_s26 = scalar_lea.hbm %s854_s6, 128  ;;  %s654_s7 = scalar_lea.hbm %s956_s2, 256 }
 0x18c   : > { %p651_p1 = scmp.ne.s32.totalorder %s854_s6, %s650_s26  ;;  %p655_p5 = scmp.lt.u32.totalorder %s854_s6, %s956_s2 }
 0x18d   : > { %p656_p6 = scmp.lt.u32.totalorder %s654_s7, %s650_s26  ;;  %p658_p9 = scmp.lt.u32.totalorder %s650_s26, %s854_s6 }
 0x18e   : > { %p652_p2 = pnand %p651_p1, %p792_p4 }
 0x18f   : > { %p657_p7 = por %p656_p6, %p655_p5 }
 0x190   : > { %p653_p3 = pneg %p652_p2 }
 0x191   : > { %p659_p10 = por %p658_p9, %p657_p7 }
 0x193   : > { %p660_p11 = pnand %p659_p10, %p653_p3 }
 0x195   : > { %663 = shalt.err (!%p660_p11)
}
 0x196   : > { %507 = dma.vmem_to_hbm [thread:$0]  (%p792_p4), %s856_s9, 128, %s854_s6, %s299_s22  }
 0x197 PF: > { %p523_p12 = scmp.ge.s32.totalorder %s718_s20, 2  ;;  %s360_s12 = sand.u32 1, %s698_s15  }
 0x198   : > { %s361_s24 = scalar_lea.sflag [#allocation3], %s360_s12 }
 0x199   : > { %p514_p13 = pnand %p523_p12, %p801_p8 }
 0x19b   : > { %689 = dma.done.wait (!%p514_p13), %s361_s24, 128  }
 0x19c   : > { %691 = vsyncadd (!%p514_p13), %s361_s24, 4294967168  ;;  %s964_s21 = sadd.s32 4294967294, %s718_s20  }
 0x19d   : > { %s369_s18 = sand.u32 1, %s964_s21  }
 0x19e   : > { %s370_s11 = scalar_lea.sflag [#allocation5], %s369_s18 }
 0x19f   : > { %693 = dma.done.wait (!%p514_p13), %s370_s11, 256  }
 0x1a0   : > { %695 = vsyncadd (!%p514_p13), %s370_s11, 4294967040  ;;  %s21_s20 = sadd.s32 1, %s718_s20   ;;  %s965_s15 = smov %s702_s16 }
 0x1a1   : > { %p18_p4 = scmp.ge.s32.totalorder %s21_s20, 4   ;;  %s966_s16 = smov %s706_s17 }
 0x1a2   : > { %s967_s17 = smov %s807_s28  ;;  %s968_s18 = smov %s714_s19 }
 0x1a3   : > { %s969_s19 = smov %s971_s23  ;;  %20 = sbr.rel (!%p18_p4) target bundleno = 6 (0x6), region = 102 }
 0x1aa   :  { %384 = vsyncpa [#allocation3], 1 }
 0x1ab   :  { %386 = vsyncpa [#allocation3 + $0x1], 1 }
 0x1ac   :  { %387 = vsyncpa [#allocation5], 1 }
 0x1ad   :  { %389 = vsyncpa [#allocation5 + $0x1], 1 }

</bundles_post_ra>
